<compile_context>
chip_gen: v5e
topology: v5e:2x2
jax: 0.10.0
libtpu: 0.0.40
codegen_flags: <defaults>
</compile_context>

<pallas_src>
import functools

import jax
import jax.numpy as jnp
from jax.experimental import pallas as pl
from jax.experimental.pallas import tpu as pltpu

STATE_DIM = 4
HIDDEN_DIM = 256
TILE_B = 512  # two 256-row MXU passes per step; amortizes per-step overhead


def _round_up(x, m):
    return ((x + m - 1) // m) * m


def value_network_kernel(x_ref, w1_ref, b1_ref, w2_ref, b2_ref, w3_ref, b3_ref,
                         o_ref):
    """One batch tile of the fused 3-layer value MLP."""
    x = x_ref[...]                                    # (TB, S)  f32
    w1 = w1_ref[...]                                  # (S,  H)  f32
    s_dim = x.shape[1]

    # --- fc1 on the VPU: relu(x @ w1 + b1), unrolled over K = state_dim -----
    acc = b1_ref[...] + x[:, 0:1] * w1[0:1, :]        # (TB, H) broadcast mul-add
    for k in range(1, s_dim):
        acc = acc + x[:, k:k + 1] * w1[k:k + 1, :]
    h1 = jnp.maximum(acc, 0.0)                        # (TB, H)  f32

    # --- fc2 on the MXU: bf16 operands, f32 accumulation ---------------------
    h2 = jnp.dot(h1.astype(jnp.bfloat16), w2_ref[...],
                 preferred_element_type=jnp.float32)  # (TB, H)  f32
    h2 = jnp.maximum(h2 + b2_ref[...], 0.0)

    # --- fc3 on VPU + XLU lane-reduce: (TB, H) -> (TB, 1) ---------------------
    out = jnp.sum(h2 * w3_ref[...], axis=-1, keepdims=True) + b3_ref[0, 0]
    o_ref[...] = out.astype(o_ref.dtype)


@functools.partial(jax.jit, static_argnames=("tile_b",))
def value_network_forward(state, params, tile_b=TILE_B):
    """state: (B, state_dim) f32. Returns (B, 1) f32."""
    w1, b1, w2, b2, w3, b3 = params
    B, S = state.shape
    H = w1.shape[1]

    # Batch tile: multiple of 8 sublanes, capped at tile_b; pad B to a multiple.
    tb = min(tile_b, _round_up(B, 8))
    b_pad = _round_up(B, tb)
    if b_pad != B:
        state = jnp.pad(state, ((0, b_pad - B), (0, 0)))

    w2_bf16 = w2.astype(jnp.bfloat16)   # MXU-native dtype, halves the weight DMA
    w3_row = w3.reshape(1, H)           # (1, H) row for the VPU/XLU reduce

    const = lambda i: (0, 0)            # weights/biases resident across grid steps
    grid = (b_pad // tb,)

    out = pl.pallas_call(
        value_network_kernel,
        out_shape=jax.ShapeDtypeStruct((b_pad, 1), jnp.float32),
        grid=grid,
        in_specs=[
            pl.BlockSpec((tb, S), lambda i: (i, 0)),            # state (tiled)
            pl.BlockSpec((S, H), const),                        # w1
            pl.BlockSpec((1, H), const),                        # b1
            pl.BlockSpec((H, H), const),                        # w2 (bf16)
            pl.BlockSpec((1, H), const),                        # b2
            pl.BlockSpec((1, H), const),                        # w3 row
            pl.BlockSpec(memory_space=pltpu.MemorySpace.SMEM),  # b3 scalar
        ],
        out_specs=pl.BlockSpec((tb, 1), lambda i: (i, 0)),
        compiler_params=pltpu.CompilerParams(
            dimension_semantics=("parallel",),  # megacore sharding on v7x
        ),
    )(state, w1, b1, w2_bf16, b2, w3_row, b3)
    return out[:B]


def init_params(key, state_dim=STATE_DIM, hidden_dim=HIDDEN_DIM):
    """PyTorch-style init: U(-1/sqrt(fan_in), 1/sqrt(fan_in)).

    Weights are stored as (in_features, out_features); biases as (1, out)."""
    ks = jax.random.split(key, 6)

    def uniform(k, shape, fan_in):
        bound = 1.0 / jnp.sqrt(fan_in)
        return jax.random.uniform(k, shape, jnp.float32, -bound, bound)

    w1 = uniform(ks[0], (state_dim, hidden_dim), state_dim)
    b1 = uniform(ks[1], (1, hidden_dim), state_dim)
    w2 = uniform(ks[2], (hidden_dim, hidden_dim), hidden_dim)
    b2 = uniform(ks[3], (1, hidden_dim), hidden_dim)
    w3 = uniform(ks[4], (hidden_dim, 1), hidden_dim)
    b3 = uniform(ks[5], (1, 1), hidden_dim)
    return (w1, b1, w2, b2, w3, b3)


def value_network_ref(state, params):
    """Pure-JAX f32 reference for correctness check."""
    w1, b1, w2, b2, w3, b3 = params
    h1 = jnp.maximum(state @ w1 + b1, 0.0)
    h2 = jnp.maximum(h1 @ w2 + b2, 0.0)
    return h2 @ w3 + b3


if __name__ == "__main__":
    key = jax.random.PRNGKey(0)
    pkey, xkey, xkey2 = jax.random.split(key, 3)
    params = init_params(pkey)

    # Small primary check (single grid step, tb = 8).
    batch = 8
    state = jax.random.normal(xkey, (batch, STATE_DIM), dtype=jnp.float32)
    out = jax.block_until_ready(value_network_forward(state, params))
    ref = value_network_ref(state, params)
    assert out.shape == (batch, 1), out.shape
    # Tolerance accounts for the bf16 fc2 matmul (f32 accumulation retained).
    assert jnp.allclose(out, ref, atol=5e-2, rtol=5e-2), (
        f"mismatch: max abs err {jnp.max(jnp.abs(out - ref))}")

    # Multi-tile + padding check (grid of 2 steps at TILE_B = 512).
    batch2 = 520
    state2 = jax.random.normal(xkey2, (batch2, STATE_DIM), dtype=jnp.float32)
    out2 = jax.block_until_ready(value_network_forward(state2, params))
    ref2 = value_network_ref(state2, params)
    assert out2.shape == (batch2, 1), out2.shape
    assert jnp.allclose(out2, ref2, atol=5e-2, rtol=5e-2), (
        f"mismatch: max abs err {jnp.max(jnp.abs(out2 - ref2))}")

    print("KERNEL_OK")
</pallas_src>

<mosaic_0001>
module attributes {stable_mosaic.version = 11 : i64} {
  func.func @value_network_kernel(%arg0: i32, %arg1: memref<8x4xf32, #tpu.memory_space<vmem>>, %arg2: memref<4x256xf32, #tpu.memory_space<vmem>>, %arg3: memref<1x256xf32, #tpu.memory_space<vmem>>, %arg4: memref<256x256xbf16, #tpu.memory_space<vmem>>, %arg5: memref<1x256xf32, #tpu.memory_space<vmem>>, %arg6: memref<1x256xf32, #tpu.memory_space<vmem>>, %arg7: memref<1x1xf32, #tpu.memory_space<smem>>, %arg8: memref<8x1xf32, #tpu.memory_space<vmem>>) attributes {dimension_semantics = [#tpu.dimension_semantics<parallel>], iteration_bounds = array<i64: 1>, scalar_prefetch = 0 : i64, scratch_operands = 0 : i64, tpu.core_type = #tpu.core_type<tc>, window_params = [{transform_indices = @transform_0, window_bounds = array<i64: 8, 4>}, {pipeline_mode = #tpu.pipeline_mode<synchronous>, transform_indices = @transform_1, window_bounds = array<i64: 4, 256>}, {pipeline_mode = #tpu.pipeline_mode<synchronous>, transform_indices = @transform_2, window_bounds = array<i64: 1, 256>}, {pipeline_mode = #tpu.pipeline_mode<synchronous>, transform_indices = @transform_3, window_bounds = array<i64: 256, 256>}, {pipeline_mode = #tpu.pipeline_mode<synchronous>, transform_indices = @transform_4, window_bounds = array<i64: 1, 256>}, {pipeline_mode = #tpu.pipeline_mode<synchronous>, transform_indices = @transform_5, window_bounds = array<i64: 1, 256>}, {transform_indices = @transform_6, window_bounds = array<i64: 1, 1>}, {transform_indices = @transform_7, window_bounds = array<i64: 8, 1>}]} {
    %c0 = arith.constant 0 : index
    %c0_0 = arith.constant 0 : index
    %0 = vector.load %arg1[%c0, %c0_0] : memref<8x4xf32, #tpu.memory_space<vmem>>, vector<8x4xf32>
    %c0_1 = arith.constant 0 : index
    %c0_2 = arith.constant 0 : index
    %1 = vector.load %arg2[%c0_1, %c0_2] : memref<4x256xf32, #tpu.memory_space<vmem>>, vector<4x256xf32>
    %c0_3 = arith.constant 0 : index
    %c0_4 = arith.constant 0 : index
    %2 = vector.load %arg3[%c0_3, %c0_4] : memref<1x256xf32, #tpu.memory_space<vmem>>, vector<1x256xf32>
    %3 = vector.extract_strided_slice %0 {offsets = [0, 0], sizes = [8, 1], strides = [1, 1]} : vector<8x4xf32> to vector<8x1xf32>
    %4 = vector.extract_strided_slice %1 {offsets = [0, 0], sizes = [1, 256], strides = [1, 1]} : vector<4x256xf32> to vector<1x256xf32>
    %5 = vector.broadcast %3 : vector<8x1xf32> to vector<8x256xf32>
    %6 = vector.broadcast %4 : vector<1x256xf32> to vector<8x256xf32>
    %7 = arith.mulf %5, %6 : vector<8x256xf32>
    %8 = vector.broadcast %2 : vector<1x256xf32> to vector<8x256xf32>
    %9 = arith.addf %8, %7 : vector<8x256xf32>
    %10 = vector.extract_strided_slice %0 {offsets = [0, 1], sizes = [8, 1], strides = [1, 1]} : vector<8x4xf32> to vector<8x1xf32>
    %11 = vector.extract_strided_slice %1 {offsets = [1, 0], sizes = [1, 256], strides = [1, 1]} : vector<4x256xf32> to vector<1x256xf32>
    %12 = vector.broadcast %10 : vector<8x1xf32> to vector<8x256xf32>
    %13 = vector.broadcast %11 : vector<1x256xf32> to vector<8x256xf32>
    %14 = arith.mulf %12, %13 : vector<8x256xf32>
    %15 = arith.addf %9, %14 : vector<8x256xf32>
    %16 = vector.extract_strided_slice %0 {offsets = [0, 2], sizes = [8, 1], strides = [1, 1]} : vector<8x4xf32> to vector<8x1xf32>
    %17 = vector.extract_strided_slice %1 {offsets = [2, 0], sizes = [1, 256], strides = [1, 1]} : vector<4x256xf32> to vector<1x256xf32>
    %18 = vector.broadcast %16 : vector<8x1xf32> to vector<8x256xf32>
    %19 = vector.broadcast %17 : vector<1x256xf32> to vector<8x256xf32>
    %20 = arith.mulf %18, %19 : vector<8x256xf32>
    %21 = arith.addf %15, %20 : vector<8x256xf32>
    %22 = vector.extract_strided_slice %0 {offsets = [0, 3], sizes = [8, 1], strides = [1, 1]} : vector<8x4xf32> to vector<8x1xf32>
    %23 = vector.extract_strided_slice %1 {offsets = [3, 0], sizes = [1, 256], strides = [1, 1]} : vector<4x256xf32> to vector<1x256xf32>
    %24 = vector.broadcast %22 : vector<8x1xf32> to vector<8x256xf32>
    %25 = vector.broadcast %23 : vector<1x256xf32> to vector<8x256xf32>
    %26 = arith.mulf %24, %25 : vector<8x256xf32>
    %27 = arith.addf %21, %26 : vector<8x256xf32>
    %cst = arith.constant 0.000000e+00 : f32
    %28 = vector.broadcast %cst : f32 to vector<8x256xf32>
    %29 = arith.maximumf %27, %28 : vector<8x256xf32>
    %30 = arith.truncf %29 : vector<8x256xf32> to vector<8x256xbf16>
    %c0_5 = arith.constant 0 : index
    %c0_6 = arith.constant 0 : index
    %31 = vector.load %arg4[%c0_5, %c0_6] : memref<256x256xbf16, #tpu.memory_space<vmem>>, vector<256x256xbf16>
    %cst_7 = arith.constant dense<0.000000e+00> : vector<8x256xf32>
    %32 = tpu.matmul %30, %31, %cst_7 {dimension_numbers = #tpu.dot_dimension_numbers<[1], [0], [0], [1], [0, 0, 1, 1], [], []>} : vector<8x256xbf16>, vector<256x256xbf16>, vector<8x256xf32> -> vector<8x256xf32>
    %c0_8 = arith.constant 0 : index
    %c0_9 = arith.constant 0 : index
    %33 = vector.load %arg5[%c0_8, %c0_9] : memref<1x256xf32, #tpu.memory_space<vmem>>, vector<1x256xf32>
    %34 = vector.broadcast %33 : vector<1x256xf32> to vector<8x256xf32>
    %35 = arith.addf %32, %34 : vector<8x256xf32>
    %cst_10 = arith.constant 0.000000e+00 : f32
    %36 = vector.broadcast %cst_10 : f32 to vector<8x256xf32>
    %37 = arith.maximumf %35, %36 : vector<8x256xf32>
    %c0_11 = arith.constant 0 : index
    %c0_12 = arith.constant 0 : index
    %38 = vector.load %arg6[%c0_11, %c0_12] : memref<1x256xf32, #tpu.memory_space<vmem>>, vector<1x256xf32>
    %39 = vector.broadcast %38 : vector<1x256xf32> to vector<8x256xf32>
    %40 = arith.mulf %37, %39 : vector<8x256xf32>
    %cst_13 = arith.constant dense<0.000000e+00> : vector<8xf32>
    %41 = vector.multi_reduction <add>, %40, %cst_13 [1] : vector<8x256xf32> to vector<8xf32>
    %42 = vector.shape_cast %41 : vector<8xf32> to vector<8x1xf32>
    %c0_14 = arith.constant 0 : index
    %c0_15 = arith.constant 0 : index
    %43 = memref.load %arg7[%c0_14, %c0_15] : memref<1x1xf32, #tpu.memory_space<smem>>
    %44 = vector.broadcast %43 : f32 to vector<8x1xf32>
    %45 = arith.addf %42, %44 : vector<8x1xf32>
    %c0_16 = arith.constant 0 : index
    %c0_17 = arith.constant 0 : index
    %46 = vector.load %arg8[%c0_16, %c0_17] : memref<8x1xf32, #tpu.memory_space<vmem>>, vector<8x1xf32>
    tpu.vector_store %arg8[%c0_16, %c0_17], %45 {strides = array<i32>} : memref<8x1xf32, #tpu.memory_space<vmem>>, vector<8x1xf32>,
    return
  }
  func.func @transform_0(%arg0: i32) -> (i32, i32) {
    %c0_i32 = arith.constant 0 : i32
    %c0_i32_0 = arith.constant 0 : i32
    return %arg0, %c0_i32 : i32, i32
  }
  func.func @transform_1(%arg0: i32) -> (i32, i32) {
    %c0_i32 = arith.constant 0 : i32
    %c0_i32_0 = arith.constant 0 : i32
    %c0_i32_1 = arith.constant 0 : i32
    return %c0_i32, %c0_i32_0 : i32, i32
  }
  func.func @transform_2(%arg0: i32) -> (i32, i32) {
    %c0_i32 = arith.constant 0 : i32
    %c0_i32_0 = arith.constant 0 : i32
    %c0_i32_1 = arith.constant 0 : i32
    return %c0_i32, %c0_i32_0 : i32, i32
  }
  func.func @transform_3(%arg0: i32) -> (i32, i32) {
    %c0_i32 = arith.constant 0 : i32
    %c0_i32_0 = arith.constant 0 : i32
    %c0_i32_1 = arith.constant 0 : i32
    return %c0_i32, %c0_i32_0 : i32, i32
  }
  func.func @transform_4(%arg0: i32) -> (i32, i32) {
    %c0_i32 = arith.constant 0 : i32
    %c0_i32_0 = arith.constant 0 : i32
    %c0_i32_1 = arith.constant 0 : i32
    return %c0_i32, %c0_i32_0 : i32, i32
  }
  func.func @transform_5(%arg0: i32) -> (i32, i32) {
    %c0_i32 = arith.constant 0 : i32
    %c0_i32_0 = arith.constant 0 : i32
    %c0_i32_1 = arith.constant 0 : i32
    return %c0_i32, %c0_i32_0 : i32, i32
  }
  func.func @transform_6(%arg0: i32) -> (i32, i32) {
    %c0_i32 = arith.constant 0 : i32
    %c0_i32_0 = arith.constant 0 : i32
    %c0_i32_1 = arith.constant 0 : i32
    return %c0_i32, %c0_i32_0 : i32, i32
  }
  func.func @transform_7(%arg0: i32) -> (i32, i32) {
    %c0_i32 = arith.constant 0 : i32
    %c0_i32_0 = arith.constant 0 : i32
    return %arg0, %c0_i32 : i32, i32
  }
}

</mosaic_0001>

<bundles_post_ra>
// kernel: value_network_forward.1
= control target key start
LH: loop header
LB: loop body
LE: loop exit
PB: predicated region body
PF: predicated region fallthrough
CT: control target
= control target key end

     0   :  { %v538_v0 = vmov 0   ;;  %v539_v2 = vmov 2   ;;  %v540_v37 = vmov 1   ;;  %v541_v38 = vmov 3   ;;  %s795_s0 = inlined_call_operand.vmem [shape: f32[8,4], index: 0, kind: input, shape index: {}]   ;;  %s796_s3 = inlined_call_operand.vmem [shape: bf16[256,256], index: 3, kind: input, shape index: {}]   ;;  %s797_s1 = inlined_call_operand.vmem [shape: f32[4,256], index: 1, kind: input, shape index: {}]   ;;  %s798_s2 = inlined_call_operand.vmem [shape: f32[1,256], index: 2, kind: input, shape index: {}]   ;;  %s799_s4 = inlined_call_operand.vmem [shape: f32[1,256], index: 4, kind: input, shape index: {}]   ;;  %s800_s5 = inlined_call_operand.vmem [shape: f32[1,256], index: 5, kind: input, shape index: {}]   ;;  %s801_s6 = inlined_call_operand.<no memory space> [shape: f32[1,1], index: 6, kind: input, shape index: {}]   ;;  %s802_s7 = inlined_call_operand.vmem [shape: f32[8,1], index: 7, kind: output, shape index: {}]  }
   0x1   :  { %533 = vset.pattern.permute.xlu0 %v538_v0  ;;  %v27_v1 = vld [vmem:[%s795_s0] sm:$0xff]  ;;  %535 = vset.pattern.permute.xlu1 %v539_v2  ;;  %v427_v3 = vld [vmem:[%s796_s3 + $0x70] sm:$0xf]  ;;  %v512_v4 = vld [vmem:[%s796_s3 + $0x74] sm:$0xf0]  ;;  %vm363_vm0 = vcmask 7168  }
   0x2   :  { %32 = vperm.xlu0 %533, %v27_v1   ;;  %66 = vperm.xlu1 %535, %v27_v1   ;;  %v428_v5 = vor.u32 %v512_v4, %v427_v3  ;;  %v491_v6 = vld [vmem:[%s796_s3 + $0xf0] sm:$0xf]  ;;  %v528_v7 = vld [vmem:[%s796_s3 + $0xf4] sm:$0xf0]  ;;  %v511_v8 = vld [vmem:[%s796_s3 + $0x74] sm:$0xf] }
   0x3   :  { %v492_v9 = vor.u32 %v528_v7, %v491_v6  ;;  %v429_v10 = vld [vmem:[%s796_s3 + $0x78] sm:$0xf0]  ;;  %v527_v11 = vld [vmem:[%s796_s3 + $0xf4] sm:$0xf]  ;;  %v419_v15 = vld [vmem:[%s796_s3 + $0x60] sm:$0xf] }
   0x4   :  { %v493_v12 = vld [vmem:[%s796_s3 + $0xf8] sm:$0xf0]  ;;  %295 = vmatpush.bf16.msra.mxu0 %v428_v5  ;;  %v432_v13 = vor.u32 %v511_v8, %v429_v10  ;;  %v510_v16 = vld [vmem:[%s796_s3 + $0x64] sm:$0xf0]  ;;  %v483_v17 = vld [vmem:[%s796_s3 + $0xe0] sm:$0xf] }
   0x5   :  { %v496_v14 = vor.u32 %v527_v11, %v493_v12  ;;  %308 = vmatpush.bf16.msra.mxu1 %v492_v9  ;;  %v420_v18 = vor.u32 %v510_v16, %v419_v15  ;;  %v526_v19 = vld [vmem:[%s796_s3 + $0xe4] sm:$0xf0]  ;;  %v509_v20 = vld [vmem:[%s796_s3 + $0x64] sm:$0xf]  ;;  %v421_v21 = vld [vmem:[%s796_s3 + $0x68] sm:$0xf0] }
   0x6   :  { %321 = vmatpush.bf16.msra.mxu2 %v432_v13  ;;  %v484_v22 = vor.u32 %v526_v19, %v483_v17  ;;  %v525_v23 = vld [vmem:[%s796_s3 + $0xe4] sm:$0xf]  ;;  %v485_v24 = vld [vmem:[%s796_s3 + $0xe8] sm:$0xf0]  ;;  %v411_v25 = vld [vmem:[%s796_s3 + $0x50] sm:$0xf]  ;;  %v424_v29 = vor.u32 %v509_v20, %v421_v21 }
   0x7   :  { %334 = vmatpush.bf16.msra.mxu3 %v496_v14  ;;  %v508_v26 = vld [vmem:[%s796_s3 + $0x54] sm:$0xf0]  ;;  %v475_v27 = vld [vmem:[%s796_s3 + $0xd0] sm:$0xf]  ;;  %v488_v30 = vor.u32 %v525_v23, %v485_v24  ;;  %v507_v31 = vld [vmem:[%s796_s3 + $0x54] sm:$0xf] }
   0x8   :  { %v524_v28 = vld [vmem:[%s796_s3 + $0xd4] sm:$0xf0]  ;;  %296 = vmatpush.bf16.msra.mxu0 %v420_v18  ;;  %v412_v32 = vor.u32 %v508_v26, %v411_v25  ;;  %v413_v34 = vld [vmem:[%s796_s3 + $0x58] sm:$0xf0]  ;;  %v523_v35 = vld [vmem:[%s796_s3 + $0xd4] sm:$0xf] }
   0x9   :  { %309 = vmatpush.bf16.msra.mxu1 %v484_v22  ;;  %v476_v33 = vor.u32 %v524_v28, %v475_v27  ;;  %v477_v36 = vld [vmem:[%s796_s3 + $0xd8] sm:$0xf0]  ;;  %v416_v39 = vor.u32 %v507_v31, %v413_v34  ;;  %v403_v41 = vld [vmem:[%s796_s3 + $0x40] sm:$0xf]  ;;  %v506_v42 = vld [vmem:[%s796_s3 + $0x44] sm:$0xf0] }
   0xa   :  { %534 = vset.pattern.permute.xlu0 %v540_v37  ;;  %536 = vset.pattern.permute.xlu1 %v541_v38  ;;  %v480_v40 = vor.u32 %v523_v35, %v477_v36  ;;  %v467_v43 = vld [vmem:[%s796_s3 + $0xc0] sm:$0xf]  ;;  %v404_v44 = vor.u32 %v506_v42, %v403_v41  ;;  %v522_v45 = vld [vmem:[%s796_s3 + $0xc4] sm:$0xf0]  ;;  %v505_v46 = vld [vmem:[%s796_s3 + $0x44] sm:$0xf] }
   0xb   :  { %52 = vperm.xlu0 %534, %v27_v1   ;;  %80 = vperm.xlu1 %536, %v27_v1   ;;  %v405_v47 = vld [vmem:[%s796_s3 + $0x48] sm:$0xf0]  ;;  %v468_v48 = vor.u32 %v522_v45, %v467_v43  ;;  %v521_v50 = vld [vmem:[%s796_s3 + $0xc4] sm:$0xf]  ;;  %v395_v53 = vld [vmem:[%s796_s3 + $0x30] sm:$0xf] }
   0xc   :  { %322 = vmatpush.bf16.msra.mxu2 %v424_v29  ;;  %335 = vmatpush.bf16.msra.mxu3 %v488_v30  ;;  %v408_v49 = vor.u32 %v505_v46, %v405_v47  ;;  %v469_v51 = vld [vmem:[%s796_s3 + $0xc8] sm:$0xf0]  ;;  %v504_v54 = vld [vmem:[%s796_s3 + $0x34] sm:$0xf0]  ;;  %v459_v55 = vld [vmem:[%s796_s3 + $0xb0] sm:$0xf] }
   0xd   :  { %297 = vmatpush.bf16.msra.mxu0 %v412_v32  ;;  %310 = vmatpush.bf16.msra.mxu1 %v476_v33  ;;  %v472_v52 = vor.u32 %v521_v50, %v469_v51  ;;  %v396_v56 = vor.u32 %v504_v54, %v395_v53  ;;  %v520_v57 = vld [vmem:[%s796_s3 + $0xb4] sm:$0xf0]  ;;  %v503_v58 = vld [vmem:[%s796_s3 + $0x34] sm:$0xf]  ;;  %v397_v60 = vld [vmem:[%s796_s3 + $0x38] sm:$0xf0] }
   0xe   :  { %v460_v59 = vor.u32 %v520_v57, %v459_v55  ;;  %v519_v61 = vld [vmem:[%s796_s3 + $0xb4] sm:$0xf]  ;;  %v461_v62 = vld [vmem:[%s796_s3 + $0xb8] sm:$0xf0]  ;;  %v400_v63 = vor.u32 %v503_v58, %v397_v60  ;;  %v387_v1 = vld [vmem:[%s796_s3 + $0x20] sm:$0xf] }
   0xf   :  { %v464_v0 = vor.u32 %v519_v61, %v461_v62  ;;  %v502_v2 = vld [vmem:[%s796_s3 + $0x24] sm:$0xf0]  ;;  %v451_v4 = vld [vmem:[%s796_s3 + $0xa0] sm:$0xf]  ;;  %v501_v6 = vld [vmem:[%s796_s3 + $0x24] sm:$0xf] }
  0x10   :  { %323 = vmatpush.bf16.msra.mxu2 %v416_v39  ;;  %336 = vmatpush.bf16.msra.mxu3 %v480_v40  ;;  %v388_v3 = vor.u32 %v502_v2, %v387_v1  ;;  %v518_v5 = vld [vmem:[%s796_s3 + $0xa4] sm:$0xf0]  ;;  %v389_v8 = vld [vmem:[%s796_s3 + $0x28] sm:$0xf0]  ;;  %v517_v9 = vld [vmem:[%s796_s3 + $0xa4] sm:$0xf] }
  0x11   :  { %298 = vmatpush.bf16.msra.mxu0 %v404_v44  ;;  %311 = vmatpush.bf16.msra.mxu1 %v468_v48  ;;  %v452_v7 = vor.u32 %v518_v5, %v451_v4  ;;  %v453_v10 = vld [vmem:[%s796_s3 + $0xa8] sm:$0xf0]  ;;  %v392_v11 = vor.u32 %v501_v6, %v389_v8  ;;  %v379_v13 = vld [vmem:[%s796_s3 + $0x10] sm:$0xf]  ;;  %v500_v14 = vld [vmem:[%s796_s3 + $0x14] sm:$0xf0] }
  0x12   :  { %v456_v12 = vor.u32 %v517_v9, %v453_v10  ;;  %v443_v15 = vld [vmem:[%s796_s3 + $0x90] sm:$0xf]  ;;  %v380_v16 = vor.u32 %v500_v14, %v379_v13  ;;  %v516_v17 = vld [vmem:[%s796_s3 + $0x94] sm:$0xf0]  ;;  %v499_v18 = vld [vmem:[%s796_s3 + $0x14] sm:$0xf] }
  0x13   :  { %537 = vset.pattern.permute.xlu0 %v541_v38  ;;  %v444_v19 = vor.u32 %v516_v17, %v443_v15  ;;  %v381_v20 = vld [vmem:[%s796_s3 + $0x18] sm:$0xf0]  ;;  %v515_v21 = vld [vmem:[%s796_s3 + $0x94] sm:$0xf]  ;;  %v371_v25 = vld [vmem:[%s796_s3] sm:$0xf] }
  0x14   :  { %324 = vmatpush.bf16.msra.mxu2 %v408_v49  ;;  %337 = vmatpush.bf16.msra.mxu3 %v472_v52  ;;  %v445_v22 = vld [vmem:[%s796_s3 + $0x98] sm:$0xf0]  ;;  %v384_v23 = vor.u32 %v499_v18, %v381_v20  ;;  %v498_v26 = vld [vmem:[%s796_s3 + $0x4] sm:$0xf0]  ;;  %v435_v27 = vld [vmem:[%s796_s3 + $0x80] sm:$0xf] }
  0x15   :  { %299 = vmatpush.bf16.msra.mxu0 %v396_v56  ;;  %312 = vmatpush.bf16.msra.mxu1 %v460_v59  ;;  %v448_v24 = vor.u32 %v515_v21, %v445_v22  ;;  %v372_v28 = vor.u32 %v498_v26, %v371_v25  ;;  %v514_v29 = vld [vmem:[%s796_s3 + $0x84] sm:$0xf0]  ;;  %v497_v30 = vld [vmem:[%s796_s3 + $0x4] sm:$0xf]  ;;  %v373_v31 = vld [vmem:[%s796_s3 + $0x8] sm:$0xf0] }
  0x16   :  { %v436_v32 = vor.u32 %v514_v29, %v435_v27  ;;  %v376_v33 = vor.u32 %v497_v30, %v373_v31  ;;  %v513_v34 = vld [vmem:[%s796_s3 + $0x84] sm:$0xf]  ;;  %v437_v35 = vld [vmem:[%s796_s3 + $0x88] sm:$0xf0]  ;;  %v29_v42 = vld [vmem:[%s798_s2] sm:$0x3] }
  0x17   :  { %v440_v36 = vor.u32 %v513_v34, %v437_v35  ;;  %v28_v37 = vld [vmem:[%s797_s1] sm:$0xff]  ;;  %v45_v51 = vperm.slane %v29_v42, 0  ;;  %v46_v52 = vperm.slane %v29_v42, 1 }
  0x18   :  { %325 = vmatpush.bf16.msra.mxu2 %v400_v63  ;;  %338 = vmatpush.bf16.msra.mxu3 %v464_v0  ;;  %v36_v38 = vperm.slane %v28_v37, 0  ;;  %v37_v39 = vperm.slane %v28_v37, 4  ;;  %v55_v45 = vperm.slane %v28_v37, 1  ;;  %v56_v46 = vperm.slane %v28_v37, 5  ;;  %v129_v17 = vld [vmem:[%s799_s4] sm:$0x3] }
  0x19   :  { %300 = vmatpush.bf16.msra.mxu0 %v388_v3  ;;  %313 = vmatpush.bf16.msra.mxu1 %v452_v7  ;;  %v69_v47 = vperm.slane %v28_v37, 2  ;;  %v70_v48 = vperm.slane %v28_v37, 6  ;;  %v83_v49 = vperm.slane %v28_v37, 3  ;;  %v84_v50 = vperm.slane %v28_v37, 7  ;;  %v349_v26 = vld [vmem:[%s800_s5] sm:$0x3] }
  0x1a   :  { %v40_v43 = vperm.slane %v36_v38, 0  ;;  %v41_v44 = vperm.slane %v37_v39, 0  ;;  %v59_v55 = vperm.slane %v55_v45, 1  ;;  %v60_v56 = vperm.slane %v56_v46, 1 }
  0x1b   :  { %v73_v57 = vperm.slane %v69_v47, 2  ;;  %v74_v58 = vperm.slane %v70_v48, 2  ;;  %v87_v59 = vperm.slane %v83_v49, 3  ;;  %v88_v60 = vperm.slane %v84_v50, 3 }
  0x1c   :  { %326 = vmatpush.bf16.msra.mxu2 %v392_v11  ;;  %339 = vmatpush.bf16.msra.mxu3 %v456_v12  ;;  %v131_v18 = vperm.slane %v129_v17, 0  ;;  %v132_v22 = vperm.slane %v129_v17, 1 }
  0x1d   :  { %301 = vmatpush.bf16.msra.mxu0 %v380_v16  ;;  %314 = vmatpush.bf16.msra.mxu1 %v444_v19 }
  0x20   :  { %327 = vmatpush.bf16.msra.mxu2 %v384_v23  ;;  %340 = vmatpush.bf16.msra.mxu3 %v448_v24 }
  0x21   :  { %302 = vmatpush.bf16.msra.mxu0 %v372_v28  ;;  %315 = vmatpush.bf16.msra.mxu1 %v436_v32  ;;  %v351_v32 = vperm.slane %v349_v26, 0 }
  0x24   :  { %328 = vmatpush.bf16.msra.mxu2 %v376_v33  ;;  %341 = vmatpush.bf16.msra.mxu3 %v440_v36  ;;  %v352_v33 = vperm.slane %v349_v26, 1 }
  0x74   :  { %v33_v40 = vpop.permute.xlu0 %32  ;;  %v67_v41 = vpop.permute.xlu1 %66 }
  0x75   :  { %v42_v53 = vmul.f32 %v40_v43, %v33_v40  ;;  %v43_v54 = vmul.f32 %v41_v44, %v33_v40  ;;  %v75_v3 = vmul.f32 %v73_v57, %v67_v41  ;;  %v76_v4 = vmul.f32 %v74_v58, %v67_v41 }
  0x76   :  { %v361_v40 = vstv %s801_s6 }
  0x77   :  { %v49_v63 = vadd.f32 %v45_v51, %v42_v53  ;;  %v50_v0 = vadd.f32 %v46_v52, %v43_v54 }
  0x7d   :  { %v53_v61 = vpop.permute.xlu0 %52  ;;  %v81_v62 = vpop.permute.xlu1 %80 }
  0x7e   :  { %v61_v1 = vmul.f32 %v59_v55, %v53_v61  ;;  %v62_v2 = vmul.f32 %v60_v56, %v53_v61  ;;  %v89_v7 = vmul.f32 %v87_v59, %v81_v62  ;;  %v90_v8 = vmul.f32 %v88_v60, %v81_v62 }
  0x80   :  { %v63_v5 = vadd.f32 %v61_v1, %v49_v63  ;;  %v64_v6 = vadd.f32 %v62_v2, %v50_v0 }
  0x82   :  { %v77_v9 = vadd.f32 %v75_v3, %v63_v5  ;;  %v78_v10 = vadd.f32 %v76_v4, %v64_v6 }
  0x84   :  { %v91_v11 = vadd.f32 %v89_v7, %v77_v9  ;;  %v92_v12 = vadd.f32 %v90_v8, %v78_v10 }
  0x86   :  { %v93_v13 = vmax.f32 %v91_v11, 0.0  ;;  %v94_v14 = vmax.f32 %v92_v12, 0.0 }
  0x88   :  { %v95_v15 = vpack.c.bf16 %v93_v13, %v93_v13  ;;  %v96_v16 = vpack.c.bf16 %v94_v14, %v94_v14 }
  0x8a   :  { %303 = vmatmul.bf16.vlgmr.msra.gmra.mxu0 %v95_v15  ;;  %316 = vmatmul.bf16.vlgmr.msra.gmra.mxu1 %v96_v16 }
  0x8b   :  { %329 = vmatmul.bf16.vlgmr.msra.gmra.mxu2 %v95_v15  ;;  %342 = vmatmul.bf16.vlgmr.msra.gmra.mxu3 %v96_v16 }
 0x107   :  { %v304_v19 = vpop.f32.mrf.mxu0  ;;  %v317_v20 = vpop.f32.mrf.mxu1 }
 0x108   :  { %v305_v21 = vadd.f32 %v304_v19, %v131_v18 }
 0x10a   :  { %v318_v23 = vadd.f32 %v317_v20, %v305_v21 }
 0x10c   :  { %v347_v30 = vmax.f32 %v318_v23, 0.0 }
 0x10e   :  { %v330_v24 = vpop.f32.mrf.mxu2  ;;  %v343_v25 = vpop.f32.mrf.mxu3  ;;  %v355_v35 = vmul.f32 %v351_v32, %v347_v30 }
 0x10f   :  { %v331_v27 = vadd.f32 %v330_v24, %v132_v22  ;;  %v306_v28 = vpop.f32.mrf.mxu0  ;;  %v319_v29 = vpop.f32.mrf.mxu1 }
 0x111   :  { %v344_v31 = vadd.f32 %v343_v25, %v331_v27 }
 0x113   :  { %v348_v34 = vmax.f32 %v344_v31, 0.0 }
 0x115   :  { %v356_v36 = vmul.f32 %v352_v33, %v348_v34 }
 0x116   :  { %v332_v37 = vpop.f32.mrf.mxu2  ;;  %v345_v38 = vpop.f32.mrf.mxu3 }
 0x117   :  { %v357_v39 = vadd.f32 %v356_v36, %v355_v35 }
 0x119   :  { %358 = vadd.xlane.f32.xlu2 %v357_v39 }
 0x18c   :  { %v359_v41 = vpop.xlane.xlu2 %358 }
 0x18d   :  { %v362_v42 = vadd.f32 %v361_v40, %v359_v41 }
 0x18f   :  { %364 = vst.msk [vmem:[%s802_s7] sm:$0xff] %vm363_vm0, %v362_v42 }

</bundles_post_ra>
